<compile_context>
chip_gen: v7x
topology: tpu7x:2x2x1
jax: 0.10.0
libtpu: 0.0.40
codegen_flags: <defaults>
</compile_context>

<pallas_src>
import functools

import jax
import jax.numpy as jnp
from jax.experimental import pallas as pl
from jax.experimental.pallas import tpu as pltpu

EPS = 1e-5        # nn.LayerNorm default
LANE = 128        # TPU lane width


def _round_up(x, m):
    return (x + m - 1) // m * m


# --------------------------------------------------------------------------- #
# Kernel
# --------------------------------------------------------------------------- #
def _mlp_kernel(n_layers, inv_dim,
                x_ref, w0_ref, b0_ref, wl_ref, bl_ref, g_ref, beta_ref,
                ones_ref, wh_ref, bh_ref, scale_ref, out_ref):
    # First (Lazy)Linear on the batch-packed layout:
    # (tile_p, PACK*d_in) @ (PACK*d_in, dim_pad), bf16 operands, f32 MXU accum.
    h = jnp.dot(x_ref[...], w0_ref[...],
                preferred_element_type=jnp.float32) + b0_ref[...]

    for i in range(n_layers):
        h = jnp.maximum(h, 0.0)                                   # ReLU
        # Segmented LayerNorm: per-segment (per real batch row) sums via a
        # block-diagonal ones matrix on the MXU (keeps the XLU free), two-pass
        # variance E[(h-mu)^2], f32 accumulation.
        mu = jnp.dot(h.astype(jnp.bfloat16), ones_ref[...],
                     preferred_element_type=jnp.float32) * inv_dim
        hc = h - mu
        var = jnp.dot((hc * hc).astype(jnp.bfloat16), ones_ref[...],
                      preferred_element_type=jnp.float32) * inv_dim
        hn = hc * jax.lax.rsqrt(var + EPS)
        hn = hn * g_ref[i] + beta_ref[i]          # gamma=0 re-zeros any pad lanes
        h = jnp.dot(hn.astype(jnp.bfloat16), wl_ref[i],
                    preferred_element_type=jnp.float32) + bl_ref[i]

    h = jnp.maximum(h, 0.0)

    # Fused heads, lane-dense (head_rows, tile_p) output:
    #   row j          = cls  of packed offset j
    #   row PACK + j   = dist of packed offset j (lengths applied via scale_ref)
    head = jax.lax.dot_general(
        wh_ref[...], h.astype(jnp.bfloat16),
        dimension_numbers=(((1,), (1,)), ((), ())),
        preferred_element_type=jnp.float32) + bh_ref[...]
    out_ref[...] = head * scale_ref[...]


# --------------------------------------------------------------------------- #
# Parameter packing (block-diagonal batch packing + bf16 cast)
# --------------------------------------------------------------------------- #
def pack_params(params, d_in, dim):
    """Pack PACK=128//dim batch rows per 128-lane vreg row (block-diag weights).

    If dim does not divide 128 we fall back to PACK=1 with zero lane padding
    (gamma=0 on pad lanes keeps them exactly zero through the network).
    """
    if LANE % dim == 0:
        pack, seg = LANE // dim, dim
    else:
        pack, seg = 1, _round_up(dim, LANE)
    dim_pad = pack * seg
    n_layers = params["w_layers"].shape[0]
    head_rows = _round_up(2 * pack, 8)

    def tile_lanes(v):   # (..., dim) -> (..., dim_pad): one copy per segment
        out = jnp.zeros(v.shape[:-1] + (dim_pad,), jnp.float32)
        for j in range(pack):
            out = out.at[..., j * seg:j * seg + dim].set(v)
        return out

    # First linear, block-diagonal over packed batch offsets.
    w0 = jnp.zeros((pack * d_in, dim_pad), jnp.float32)
    for j in range(pack):
        w0 = w0.at[j * d_in:(j + 1) * d_in, j * seg:j * seg + dim].set(params["w0"])
    b0 = tile_lanes(params["b0"])

    # Hidden linears, block-diagonal (dim_pad, dim_pad).
    wl = jnp.zeros((n_layers, dim_pad, dim_pad), jnp.float32)
    for j in range(pack):
        wl = wl.at[:, j * seg:j * seg + dim, j * seg:j * seg + dim].set(
            params["w_layers"])
    bl = tile_lanes(params["b_layers"])
    g = tile_lanes(params["ln_gamma"])
    beta = tile_lanes(params["ln_beta"])

    # Block-diagonal ones: (h @ ones)[:, lane in seg j] = sum over seg-j real lanes.
    ones_m = jnp.zeros((dim_pad, dim_pad), jnp.float32)
    for j in range(pack):
        ones_m = ones_m.at[j * seg:j * seg + dim, j * seg:(j + 1) * seg].set(1.0)

    # Fused heads: row j = cls of offset j, row pack+j = dist of offset j.
    wh = jnp.zeros((head_rows, dim_pad), jnp.float32)
    for j in range(pack):
        wh = wh.at[j, j * seg:j * seg + dim].set(params["w_cls"][:, 0])
        wh = wh.at[pack + j, j * seg:j * seg + dim].set(params["w_dist"][:, 0])
    bh = jnp.zeros((head_rows, 1), jnp.float32)
    bh = bh.at[0:pack, 0].set(params["b_cls"][0, 0])
    bh = bh.at[pack:2 * pack, 0].set(params["b_dist"][0, 0])

    return dict(w0=w0.astype(jnp.bfloat16), b0=b0,
                w_layers=wl.astype(jnp.bfloat16), b_layers=bl,
                ln_gamma=g, ln_beta=beta,
                ones=ones_m.astype(jnp.bfloat16),
                w_heads=wh.astype(jnp.bfloat16), b_heads=bh,
                n_layers=n_layers, dim=dim, d_in=d_in,
                pack=pack, seg=seg, dim_pad=dim_pad, head_rows=head_rows)


# --------------------------------------------------------------------------- #
# Wrapper
# --------------------------------------------------------------------------- #
def mlpnet_forward(x, lengths, p, *, initial=False, max_tile_p=2048):
    """x: (B, n_points, 3) float32; lengths: (B,) float32; p: pack_params(...)."""
    B = x.shape[0]
    if initial:
        # The module overwrites cls/dist unconditionally; skip the kernel.
        return (jnp.full((B,), 100.0, jnp.float32),
                jnp.zeros((B,), jnp.float32))

    pack, d_in, dim_pad = p["pack"], p["d_in"], p["dim_pad"]
    head_rows, n_layers, dim = p["head_rows"], p["n_layers"], p["dim"]

    # Pad batch only to a sublane-friendly multiple of 8*pack (no lane padding
    # of the activation stream in HBM).
    b_pad = _round_up(B, 8 * pack)
    rows = b_pad // pack

    x_flat = x.reshape(B, -1).astype(jnp.bfloat16)
    lengths_f = lengths.astype(jnp.float32)
    if b_pad != B:
        x_flat = jnp.pad(x_flat, ((0, b_pad - B), (0, 0)))
        lengths_f = jnp.pad(lengths_f, (0, b_pad - B))
    x_pk = x_flat.reshape(rows, pack * d_in)   # row r packs batch rows r*pack..+pack-1
    len_pk = lengths_f.reshape(rows, pack).T   # (pack, rows)

    # Per-head-row output scale: 1 for cls rows, lengths for dist rows.
    parts = [jnp.ones((pack, rows), jnp.float32), len_pk]
    if head_rows > 2 * pack:
        parts.append(jnp.ones((head_rows - 2 * pack, rows), jnp.float32))
    scale = jnp.concatenate(parts, axis=0)

    max_tile_p = _round_up(max_tile_p, LANE)
    tile_p = rows if rows <= max_tile_p else max_tile_p
    grid = (pl.cdiv(rows, tile_p),)

    kernel = functools.partial(_mlp_kernel, n_layers, 1.0 / float(dim))

    c2 = lambda i: (0, 0)
    c3 = lambda i: (0, 0, 0)
    in_specs = [
        pl.BlockSpec((tile_p, pack * d_in), lambda i: (i, 0)),   # activation stream
        pl.BlockSpec(p["w0"].shape, c2),                         # weights resident
        pl.BlockSpec(p["b0"].shape, c2),
        pl.BlockSpec(p["w_layers"].shape, c3),
        pl.BlockSpec(p["b_layers"].shape, c3),
        pl.BlockSpec(p["ln_gamma"].shape, c3),
        pl.BlockSpec(p["ln_beta"].shape, c3),
        pl.BlockSpec(p["ones"].shape, c2),
        pl.BlockSpec(p["w_heads"].shape, c2),
        pl.BlockSpec(p["b_heads"].shape, c2),
        pl.BlockSpec((head_rows, tile_p), lambda i: (0, i)),     # output scale
    ]
    out_specs = pl.BlockSpec((head_rows, tile_p), lambda i: (0, i))

    args = (x_pk, p["w0"], p["b0"], p["w_layers"], p["b_layers"],
            p["ln_gamma"], p["ln_beta"], p["ones"], p["w_heads"], p["b_heads"],
            scale)
    flops = 2 * rows * (pack * d_in * dim_pad
                        + n_layers * 3 * dim_pad * dim_pad
                        + dim_pad * head_rows)
    bytes_accessed = (sum(int(a.size) * a.dtype.itemsize for a in args)
                      + head_rows * rows * 4)

    out = pl.pallas_call(
        kernel,
        out_shape=jax.ShapeDtypeStruct((head_rows, rows), jnp.float32),
        grid=grid,
        in_specs=in_specs,
        out_specs=out_specs,
        compiler_params=pltpu.CompilerParams(
            dimension_semantics=("parallel",),
            vmem_limit_bytes=32 * 1024 * 1024),
        cost_estimate=pl.CostEstimate(
            flops=int(flops),
            transcendentals=int(rows * dim_pad * n_layers),
            bytes_accessed=int(bytes_accessed)),
    )(*args)

    # Unpack: out[j, r] = cls(batch r*pack+j), out[pack+j, r] = dist(batch r*pack+j).
    cls = out[:pack, :].T.reshape(-1)[:B]
    dist = out[pack:2 * pack, :].T.reshape(-1)[:B]
    return cls, dist


# --------------------------------------------------------------------------- #
# Init + pure-JAX reference
# --------------------------------------------------------------------------- #
def init_params(key, d_in, dim, n_layers):
    """Deterministic init matching PyTorch Linear default U(-1/sqrt(fan_in), +)."""
    ks = jax.random.split(key, 4)

    def lin(k, fan_in, fan_out):
        kw, kb = jax.random.split(k)
        bound = 1.0 / jnp.sqrt(fan_in)
        w = jax.random.uniform(kw, (fan_in, fan_out), jnp.float32, -bound, bound)
        b = jax.random.uniform(kb, (1, fan_out), jnp.float32, -bound, bound)
        return w, b

    w0, b0 = lin(ks[0], d_in, dim)

    wl, bl = [], []
    lks = jax.random.split(ks[1], max(n_layers, 1))
    for i in range(n_layers):
        w, b = lin(lks[i], dim, dim)
        wl.append(w)
        bl.append(b)
    w_layers = jnp.stack(wl) if n_layers else jnp.zeros((0, dim, dim), jnp.float32)
    b_layers = jnp.stack(bl) if n_layers else jnp.zeros((0, 1, dim), jnp.float32)
    ln_gamma = jnp.ones((n_layers, 1, dim), jnp.float32)
    ln_beta = jnp.zeros((n_layers, 1, dim), jnp.float32)

    w_cls, b_cls = lin(ks[2], dim, 1)
    w_dist, b_dist = lin(ks[3], dim, 1)

    return dict(w0=w0, b0=b0,
                w_layers=w_layers, b_layers=b_layers,
                ln_gamma=ln_gamma, ln_beta=ln_beta,
                w_cls=w_cls, b_cls=b_cls,
                w_dist=w_dist, b_dist=b_dist)


def reference_forward(x, lengths, params, matmul_dtype=jnp.float32):
    """Pure-JAX reference replicating the PyTorch module.

    matmul_dtype=bfloat16 mirrors the kernel's mixed precision (bf16 operands,
    f32 accumulation) for a tighter numerical comparison.
    """
    B = x.shape[0]

    def mm(a, w):
        return jnp.dot(a.astype(matmul_dtype), w.astype(matmul_dtype),
                       preferred_element_type=jnp.float32)

    h = mm(x.reshape(B, -1), params["w0"]) + params["b0"]
    for i in range(params["w_layers"].shape[0]):
        h = jnp.maximum(h, 0.0)
        mu = h.mean(-1, keepdims=True)
        var = jnp.square(h - mu).mean(-1, keepdims=True)
        h = (h - mu) / jnp.sqrt(var + EPS) * params["ln_gamma"][i] + params["ln_beta"][i]
        h = mm(h, params["w_layers"][i]) + params["b_layers"][i]
    h = jnp.maximum(h, 0.0)
    cls = (mm(h, params["w_cls"]) + params["b_cls"]).reshape(B)
    dist = (mm(h, params["w_dist"]) + params["b_dist"]).reshape(B) * lengths
    return cls, dist


# --------------------------------------------------------------------------- #
if __name__ == "__main__":
    # Small shapes consistent with MLPNet: n_points=8 -> D_in=24, dim=32, 2 layers.
    B, N_POINTS, DIM, N_LAYERS = 16, 8, 32, 2
    D_IN = N_POINTS * 3

    key = jax.random.PRNGKey(0)
    kx, kl, kp = jax.random.split(key, 3)
    x = jax.random.normal(kx, (B, N_POINTS, 3), jnp.float32)
    lengths = jnp.square(jax.random.normal(kl, (B,), jnp.float32))

    params = init_params(kp, D_IN, DIM, N_LAYERS)
    packed = pack_params(params, D_IN, DIM)

    cls, dist = mlpnet_forward(x, lengths, packed)
    cls = jax.block_until_ready(cls)
    dist = jax.block_until_ready(dist)

    # Precision-matched reference (bf16 matmul operands, f32 accumulation).
    cls_bf, dist_bf = reference_forward(x, lengths, params, jnp.bfloat16)
    assert jnp.allclose(cls, cls_bf, atol=5e-2, rtol=5e-2)
    assert jnp.allclose(dist, dist_bf, atol=5e-2, rtol=5e-2)

    # Full-f32 PyTorch-equivalent reference (looser: bf16 operand rounding).
    cls_f32, dist_f32 = reference_forward(x, lengths, params, jnp.float32)
    assert jnp.allclose(cls, cls_f32, atol=1.5e-1, rtol=7e-2)
    assert jnp.allclose(dist, dist_f32, atol=1.5e-1, rtol=7e-2)

    # initial=True path (cls=100, dist=0), now short-circuited before the kernel.
    cls_i, dist_i = mlpnet_forward(x, lengths, packed, initial=True)
    assert cls_i.shape == (B,) and dist_i.shape == (B,)
    assert jnp.all(cls_i == 100.0) and jnp.all(dist_i == 0.0)

    # Multi-tile grid with a partial (masked) last tile: batch not a multiple
    # of the tile, exercised with a reduced tile size.
    B2 = 2200
    kx2, kl2 = jax.random.split(jax.random.PRNGKey(1))
    x2 = jax.random.normal(kx2, (B2, N_POINTS, 3), jnp.float32)
    len2 = jnp.square(jax.random.normal(kl2, (B2,), jnp.float32))
    cls2, dist2 = mlpnet_forward(x2, len2, packed, max_tile_p=256)
    cls2 = jax.block_until_ready(cls2)
    dist2 = jax.block_until_ready(dist2)
    cls2_bf, dist2_bf = reference_forward(x2, len2, params, jnp.bfloat16)
    assert jnp.allclose(cls2, cls2_bf, atol=6e-2, rtol=6e-2)
    assert jnp.allclose(dist2, dist2_bf, atol=6e-2, rtol=6e-2)

    print("KERNEL_OK")
</pallas_src>

<mosaic_0001>
module attributes {stable_mosaic.version = 11 : i64} {
  func.func @_mlp_kernel(%arg0: i32, %arg1: memref<8x96xbf16, #tpu.memory_space<vmem>>, %arg2: memref<96x128xbf16, #tpu.memory_space<vmem>>, %arg3: memref<1x128xf32, #tpu.memory_space<vmem>>, %arg4: memref<2x128x128xbf16, #tpu.memory_space<vmem>>, %arg5: memref<2x1x128xf32, #tpu.memory_space<vmem>>, %arg6: memref<2x1x128xf32, #tpu.memory_space<vmem>>, %arg7: memref<2x1x128xf32, #tpu.memory_space<vmem>>, %arg8: memref<128x128xbf16, #tpu.memory_space<vmem>>, %arg9: memref<8x128xbf16, #tpu.memory_space<vmem>>, %arg10: memref<8x1xf32, #tpu.memory_space<vmem>>, %arg11: memref<8x8xf32, #tpu.memory_space<vmem>>, %arg12: memref<8x8xf32, #tpu.memory_space<vmem>>) attributes {dimension_semantics = [#tpu.dimension_semantics<parallel>], iteration_bounds = array<i64: 1>, scalar_prefetch = 0 : i64, scratch_operands = 0 : i64, tpu.core_type = #tpu.core_type<tc>, window_params = [{transform_indices = @transform_0, window_bounds = array<i64: 8, 96>}, {pipeline_mode = #tpu.pipeline_mode<synchronous>, transform_indices = @transform_1, window_bounds = array<i64: 96, 128>}, {pipeline_mode = #tpu.pipeline_mode<synchronous>, transform_indices = @transform_2, window_bounds = array<i64: 1, 128>}, {pipeline_mode = #tpu.pipeline_mode<synchronous>, transform_indices = @transform_3, window_bounds = array<i64: 2, 128, 128>}, {pipeline_mode = #tpu.pipeline_mode<synchronous>, transform_indices = @transform_4, window_bounds = array<i64: 2, 1, 128>}, {pipeline_mode = #tpu.pipeline_mode<synchronous>, transform_indices = @transform_5, window_bounds = array<i64: 2, 1, 128>}, {pipeline_mode = #tpu.pipeline_mode<synchronous>, transform_indices = @transform_6, window_bounds = array<i64: 2, 1, 128>}, {pipeline_mode = #tpu.pipeline_mode<synchronous>, transform_indices = @transform_7, window_bounds = array<i64: 128, 128>}, {pipeline_mode = #tpu.pipeline_mode<synchronous>, transform_indices = @transform_8, window_bounds = array<i64: 8, 128>}, {pipeline_mode = #tpu.pipeline_mode<synchronous>, transform_indices = @transform_9, window_bounds = array<i64: 8, 1>}, {transform_indices = @transform_10, window_bounds = array<i64: 8, 8>}, {transform_indices = @transform_11, window_bounds = array<i64: 8, 8>}]} {
    %c0 = arith.constant 0 : index
    %c0_0 = arith.constant 0 : index
    %0 = vector.load %arg1[%c0, %c0_0] : memref<8x96xbf16, #tpu.memory_space<vmem>>, vector<8x96xbf16>
    %c0_1 = arith.constant 0 : index
    %c0_2 = arith.constant 0 : index
    %1 = vector.load %arg2[%c0_1, %c0_2] : memref<96x128xbf16, #tpu.memory_space<vmem>>, vector<96x128xbf16>
    %cst = arith.constant dense<0.000000e+00> : vector<8x128xf32>
    %2 = tpu.matmul %0, %1, %cst {dimension_numbers = #tpu.dot_dimension_numbers<[1], [0], [0], [1], [0, 0, 1, 1], [], []>} : vector<8x96xbf16>, vector<96x128xbf16>, vector<8x128xf32> -> vector<8x128xf32>
    %c0_3 = arith.constant 0 : index
    %c0_4 = arith.constant 0 : index
    %3 = vector.load %arg3[%c0_3, %c0_4] : memref<1x128xf32, #tpu.memory_space<vmem>>, vector<1x128xf32>
    %4 = vector.broadcast %3 : vector<1x128xf32> to vector<8x128xf32>
    %5 = arith.addf %2, %4 : vector<8x128xf32>
    %cst_5 = arith.constant 0.000000e+00 : f32
    %6 = vector.broadcast %cst_5 : f32 to vector<8x128xf32>
    %7 = arith.maximumf %5, %6 : vector<8x128xf32>
    %8 = arith.truncf %7 : vector<8x128xf32> to vector<8x128xbf16>
    %c0_6 = arith.constant 0 : index
    %c0_7 = arith.constant 0 : index
    %9 = vector.load %arg8[%c0_6, %c0_7] : memref<128x128xbf16, #tpu.memory_space<vmem>>, vector<128x128xbf16>
    %cst_8 = arith.constant dense<0.000000e+00> : vector<8x128xf32>
    %10 = tpu.matmul %8, %9, %cst_8 {dimension_numbers = #tpu.dot_dimension_numbers<[1], [0], [0], [1], [0, 0, 1, 1], [], []>} : vector<8x128xbf16>, vector<128x128xbf16>, vector<8x128xf32> -> vector<8x128xf32>
    %cst_9 = arith.constant 3.125000e-02 : f32
    %11 = vector.broadcast %cst_9 : f32 to vector<8x128xf32>
    %12 = arith.mulf %10, %11 : vector<8x128xf32>
    %13 = arith.subf %7, %12 : vector<8x128xf32>
    %14 = arith.mulf %13, %13 : vector<8x128xf32>
    %15 = arith.truncf %14 : vector<8x128xf32> to vector<8x128xbf16>
    %c0_10 = arith.constant 0 : index
    %c0_11 = arith.constant 0 : index
    %16 = vector.load %arg8[%c0_10, %c0_11] : memref<128x128xbf16, #tpu.memory_space<vmem>>, vector<128x128xbf16>
    %cst_12 = arith.constant dense<0.000000e+00> : vector<8x128xf32>
    %17 = tpu.matmul %15, %16, %cst_12 {dimension_numbers = #tpu.dot_dimension_numbers<[1], [0], [0], [1], [0, 0, 1, 1], [], []>} : vector<8x128xbf16>, vector<128x128xbf16>, vector<8x128xf32> -> vector<8x128xf32>
    %cst_13 = arith.constant 3.125000e-02 : f32
    %18 = vector.broadcast %cst_13 : f32 to vector<8x128xf32>
    %19 = arith.mulf %17, %18 : vector<8x128xf32>
    %cst_14 = arith.constant 9.99999974E-6 : f32
    %20 = vector.broadcast %cst_14 : f32 to vector<8x128xf32>
    %21 = arith.addf %19, %20 : vector<8x128xf32>
    %22 = math.rsqrt %21 : vector<8x128xf32>
    %23 = arith.mulf %13, %22 : vector<8x128xf32>
    %c0_15 = arith.constant 0 : index
    %c0_16 = arith.constant 0 : index
    %c0_17 = arith.constant 0 : index
    %24 = vector.load %arg6[%c0_15, %c0_16, %c0_17] : memref<2x1x128xf32, #tpu.memory_space<vmem>>, vector<1x1x128xf32>
    %25 = vector.shape_cast %24 : vector<1x1x128xf32> to vector<1x128xf32>
    %26 = vector.broadcast %25 : vector<1x128xf32> to vector<8x128xf32>
    %27 = arith.mulf %23, %26 : vector<8x128xf32>
    %c0_18 = arith.constant 0 : index
    %c0_19 = arith.constant 0 : index
    %c0_20 = arith.constant 0 : index
    %28 = vector.load %arg7[%c0_18, %c0_19, %c0_20] : memref<2x1x128xf32, #tpu.memory_space<vmem>>, vector<1x1x128xf32>
    %29 = vector.shape_cast %28 : vector<1x1x128xf32> to vector<1x128xf32>
    %30 = vector.broadcast %29 : vector<1x128xf32> to vector<8x128xf32>
    %31 = arith.addf %27, %30 : vector<8x128xf32>
    %32 = arith.truncf %31 : vector<8x128xf32> to vector<8x128xbf16>
    %c0_21 = arith.constant 0 : index
    %c0_22 = arith.constant 0 : index
    %c0_23 = arith.constant 0 : index
    %33 = vector.load %arg4[%c0_21, %c0_22, %c0_23] : memref<2x128x128xbf16, #tpu.memory_space<vmem>>, vector<1x128x128xbf16>
    %34 = vector.shape_cast %33 : vector<1x128x128xbf16> to vector<128x128xbf16>
    %cst_24 = arith.constant dense<0.000000e+00> : vector<8x128xf32>
    %35 = tpu.matmul %32, %34, %cst_24 {dimension_numbers = #tpu.dot_dimension_numbers<[1], [0], [0], [1], [0, 0, 1, 1], [], []>} : vector<8x128xbf16>, vector<128x128xbf16>, vector<8x128xf32> -> vector<8x128xf32>
    %c0_25 = arith.constant 0 : index
    %c0_26 = arith.constant 0 : index
    %c0_27 = arith.constant 0 : index
    %36 = vector.load %arg5[%c0_25, %c0_26, %c0_27] : memref<2x1x128xf32, #tpu.memory_space<vmem>>, vector<1x1x128xf32>
    %37 = vector.shape_cast %36 : vector<1x1x128xf32> to vector<1x128xf32>
    %38 = vector.broadcast %37 : vector<1x128xf32> to vector<8x128xf32>
    %39 = arith.addf %35, %38 : vector<8x128xf32>
    %cst_28 = arith.constant 0.000000e+00 : f32
    %40 = vector.broadcast %cst_28 : f32 to vector<8x128xf32>
    %41 = arith.maximumf %39, %40 : vector<8x128xf32>
    %42 = arith.truncf %41 : vector<8x128xf32> to vector<8x128xbf16>
    %c0_29 = arith.constant 0 : index
    %c0_30 = arith.constant 0 : index
    %43 = vector.load %arg8[%c0_29, %c0_30] : memref<128x128xbf16, #tpu.memory_space<vmem>>, vector<128x128xbf16>
    %cst_31 = arith.constant dense<0.000000e+00> : vector<8x128xf32>
    %44 = tpu.matmul %42, %43, %cst_31 {dimension_numbers = #tpu.dot_dimension_numbers<[1], [0], [0], [1], [0, 0, 1, 1], [], []>} : vector<8x128xbf16>, vector<128x128xbf16>, vector<8x128xf32> -> vector<8x128xf32>
    %cst_32 = arith.constant 3.125000e-02 : f32
    %45 = vector.broadcast %cst_32 : f32 to vector<8x128xf32>
    %46 = arith.mulf %44, %45 : vector<8x128xf32>
    %47 = arith.subf %41, %46 : vector<8x128xf32>
    %48 = arith.mulf %47, %47 : vector<8x128xf32>
    %49 = arith.truncf %48 : vector<8x128xf32> to vector<8x128xbf16>
    %c0_33 = arith.constant 0 : index
    %c0_34 = arith.constant 0 : index
    %50 = vector.load %arg8[%c0_33, %c0_34] : memref<128x128xbf16, #tpu.memory_space<vmem>>, vector<128x128xbf16>
    %cst_35 = arith.constant dense<0.000000e+00> : vector<8x128xf32>
    %51 = tpu.matmul %49, %50, %cst_35 {dimension_numbers = #tpu.dot_dimension_numbers<[1], [0], [0], [1], [0, 0, 1, 1], [], []>} : vector<8x128xbf16>, vector<128x128xbf16>, vector<8x128xf32> -> vector<8x128xf32>
    %cst_36 = arith.constant 3.125000e-02 : f32
    %52 = vector.broadcast %cst_36 : f32 to vector<8x128xf32>
    %53 = arith.mulf %51, %52 : vector<8x128xf32>
    %cst_37 = arith.constant 9.99999974E-6 : f32
    %54 = vector.broadcast %cst_37 : f32 to vector<8x128xf32>
    %55 = arith.addf %53, %54 : vector<8x128xf32>
    %56 = math.rsqrt %55 : vector<8x128xf32>
    %57 = arith.mulf %47, %56 : vector<8x128xf32>
    %c1 = arith.constant 1 : index
    %c0_38 = arith.constant 0 : index
    %c0_39 = arith.constant 0 : index
    %58 = vector.load %arg6[%c1, %c0_38, %c0_39] : memref<2x1x128xf32, #tpu.memory_space<vmem>>, vector<1x1x128xf32>
    %59 = vector.shape_cast %58 : vector<1x1x128xf32> to vector<1x128xf32>
    %60 = vector.broadcast %59 : vector<1x128xf32> to vector<8x128xf32>
    %61 = arith.mulf %57, %60 : vector<8x128xf32>
    %c1_40 = arith.constant 1 : index
    %c0_41 = arith.constant 0 : index
    %c0_42 = arith.constant 0 : index
    %62 = vector.load %arg7[%c1_40, %c0_41, %c0_42] : memref<2x1x128xf32, #tpu.memory_space<vmem>>, vector<1x1x128xf32>
    %63 = vector.shape_cast %62 : vector<1x1x128xf32> to vector<1x128xf32>
    %64 = vector.broadcast %63 : vector<1x128xf32> to vector<8x128xf32>
    %65 = arith.addf %61, %64 : vector<8x128xf32>
    %66 = arith.truncf %65 : vector<8x128xf32> to vector<8x128xbf16>
    %c1_43 = arith.constant 1 : index
    %c0_44 = arith.constant 0 : index
    %c0_45 = arith.constant 0 : index
    %67 = vector.load %arg4[%c1_43, %c0_44, %c0_45] : memref<2x128x128xbf16, #tpu.memory_space<vmem>>, vector<1x128x128xbf16>
    %68 = vector.shape_cast %67 : vector<1x128x128xbf16> to vector<128x128xbf16>
    %cst_46 = arith.constant dense<0.000000e+00> : vector<8x128xf32>
    %69 = tpu.matmul %66, %68, %cst_46 {dimension_numbers = #tpu.dot_dimension_numbers<[1], [0], [0], [1], [0, 0, 1, 1], [], []>} : vector<8x128xbf16>, vector<128x128xbf16>, vector<8x128xf32> -> vector<8x128xf32>
    %c1_47 = arith.constant 1 : index
    %c0_48 = arith.constant 0 : index
    %c0_49 = arith.constant 0 : index
    %70 = vector.load %arg5[%c1_47, %c0_48, %c0_49] : memref<2x1x128xf32, #tpu.memory_space<vmem>>, vector<1x1x128xf32>
    %71 = vector.shape_cast %70 : vector<1x1x128xf32> to vector<1x128xf32>
    %72 = vector.broadcast %71 : vector<1x128xf32> to vector<8x128xf32>
    %73 = arith.addf %69, %72 : vector<8x128xf32>
    %cst_50 = arith.constant 0.000000e+00 : f32
    %74 = vector.broadcast %cst_50 : f32 to vector<8x128xf32>
    %75 = arith.maximumf %73, %74 : vector<8x128xf32>
    %c0_51 = arith.constant 0 : index
    %c0_52 = arith.constant 0 : index
    %76 = vector.load %arg9[%c0_51, %c0_52] : memref<8x128xbf16, #tpu.memory_space<vmem>>, vector<8x128xbf16>
    %77 = arith.truncf %75 : vector<8x128xf32> to vector<8x128xbf16>
    %cst_53 = arith.constant dense<0.000000e+00> : vector<8x8xf32>
    %78 = tpu.matmul %76, %77, %cst_53 {dimension_numbers = #tpu.dot_dimension_numbers<[1], [1], [0], [0], [0, 0, 1, 0], [], []>} : vector<8x128xbf16>, vector<8x128xbf16>, vector<8x8xf32> -> vector<8x8xf32>
    %c0_54 = arith.constant 0 : index
    %c0_55 = arith.constant 0 : index
    %79 = vector.load %arg10[%c0_54, %c0_55] : memref<8x1xf32, #tpu.memory_space<vmem>>, vector<8x1xf32>
    %80 = vector.broadcast %79 : vector<8x1xf32> to vector<8x8xf32>
    %81 = arith.addf %78, %80 : vector<8x8xf32>
    %c0_56 = arith.constant 0 : index
    %c0_57 = arith.constant 0 : index
    %82 = vector.load %arg11[%c0_56, %c0_57] : memref<8x8xf32, #tpu.memory_space<vmem>>, vector<8x8xf32>
    %83 = arith.mulf %81, %82 : vector<8x8xf32>
    %c0_58 = arith.constant 0 : index
    %c0_59 = arith.constant 0 : index
    %84 = vector.load %arg12[%c0_58, %c0_59] : memref<8x8xf32, #tpu.memory_space<vmem>>, vector<8x8xf32>
    tpu.vector_store %arg12[%c0_58, %c0_59], %83 {strides = array<i32>} : memref<8x8xf32, #tpu.memory_space<vmem>>, vector<8x8xf32>,
    return
  }
  func.func @transform_0(%arg0: i32) -> (i32, i32) {
    %c0_i32 = arith.constant 0 : i32
    %c0_i32_0 = arith.constant 0 : i32
    return %arg0, %c0_i32 : i32, i32
  }
  func.func @transform_1(%arg0: i32) -> (i32, i32) {
    %c0_i32 = arith.constant 0 : i32
    %c0_i32_0 = arith.constant 0 : i32
    %c0_i32_1 = arith.constant 0 : i32
    return %c0_i32, %c0_i32_0 : i32, i32
  }
  func.func @transform_2(%arg0: i32) -> (i32, i32) {
    %c0_i32 = arith.constant 0 : i32
    %c0_i32_0 = arith.constant 0 : i32
    %c0_i32_1 = arith.constant 0 : i32
    return %c0_i32, %c0_i32_0 : i32, i32
  }
  func.func @transform_3(%arg0: i32) -> (i32, i32, i32) {
    %c0_i32 = arith.constant 0 : i32
    %c0_i32_0 = arith.constant 0 : i32
    %c0_i32_1 = arith.constant 0 : i32
    %c0_i32_2 = arith.constant 0 : i32
    return %c0_i32, %c0_i32_0, %c0_i32_1 : i32, i32, i32
  }
  func.func @transform_4(%arg0: i32) -> (i32, i32, i32) {
    %c0_i32 = arith.constant 0 : i32
    %c0_i32_0 = arith.constant 0 : i32
    %c0_i32_1 = arith.constant 0 : i32
    %c0_i32_2 = arith.constant 0 : i32
    return %c0_i32, %c0_i32_0, %c0_i32_1 : i32, i32, i32
  }
  func.func @transform_5(%arg0: i32) -> (i32, i32, i32) {
    %c0_i32 = arith.constant 0 : i32
    %c0_i32_0 = arith.constant 0 : i32
    %c0_i32_1 = arith.constant 0 : i32
    %c0_i32_2 = arith.constant 0 : i32
    return %c0_i32, %c0_i32_0, %c0_i32_1 : i32, i32, i32
  }
  func.func @transform_6(%arg0: i32) -> (i32, i32, i32) {
    %c0_i32 = arith.constant 0 : i32
    %c0_i32_0 = arith.constant 0 : i32
    %c0_i32_1 = arith.constant 0 : i32
    %c0_i32_2 = arith.constant 0 : i32
    return %c0_i32, %c0_i32_0, %c0_i32_1 : i32, i32, i32
  }
  func.func @transform_7(%arg0: i32) -> (i32, i32) {
    %c0_i32 = arith.constant 0 : i32
    %c0_i32_0 = arith.constant 0 : i32
    %c0_i32_1 = arith.constant 0 : i32
    return %c0_i32, %c0_i32_0 : i32, i32
  }
  func.func @transform_8(%arg0: i32) -> (i32, i32) {
    %c0_i32 = arith.constant 0 : i32
    %c0_i32_0 = arith.constant 0 : i32
    %c0_i32_1 = arith.constant 0 : i32
    return %c0_i32, %c0_i32_0 : i32, i32
  }
  func.func @transform_9(%arg0: i32) -> (i32, i32) {
    %c0_i32 = arith.constant 0 : i32
    %c0_i32_0 = arith.constant 0 : i32
    %c0_i32_1 = arith.constant 0 : i32
    return %c0_i32, %c0_i32_0 : i32, i32
  }
  func.func @transform_10(%arg0: i32) -> (i32, i32) {
    %c0_i32 = arith.constant 0 : i32
    %c0_i32_0 = arith.constant 0 : i32
    return %c0_i32, %arg0 : i32, i32
  }
  func.func @transform_11(%arg0: i32) -> (i32, i32) {
    %c0_i32 = arith.constant 0 : i32
    %c0_i32_0 = arith.constant 0 : i32
    return %c0_i32, %arg0 : i32, i32
  }
}

</mosaic_0001>

<bundles_post_ra>
// kernel: tpu_custom_call.1
= control target key start
LH: loop header
LB: loop body
LE: loop exit
PB: predicated region body
PF: predicated region fallthrough
CT: control target
= control target key end

     0   :  { %16 = vsyncpa [#allocation3], 0  ;;  %s1478_s0 = inlined_call_operand.vmem [shape: bf16[8,96], index: 0, kind: input, shape index: {}]   ;;  %s1479_s1 = inlined_call_operand.hbm [shape: bf16[96,128], index: 1, kind: input, shape index: {}]   ;;  %s1480_s2 = inlined_call_operand.hbm [shape: f32[1,128], index: 2, kind: input, shape index: {}]   ;;  %s1481_s3 = inlined_call_operand.hbm [shape: bf16[2,128,128], index: 3, kind: input, shape index: {}]   ;;  %s1482_s4 = inlined_call_operand.vmem [shape: f32[2,1,128], index: 4, kind: input, shape index: {}]   ;;  %s1483_s5 = inlined_call_operand.vmem [shape: f32[2,1,128], index: 5, kind: input, shape index: {}]   ;;  %s1484_s6 = inlined_call_operand.vmem [shape: f32[2,1,128], index: 6, kind: input, shape index: {}]   ;;  %s1485_s7 = inlined_call_operand.hbm [shape: bf16[128,128], index: 7, kind: input, shape index: {}]   ;;  %s1486_s8 = inlined_call_operand.vmem [shape: bf16[8,128], index: 8, kind: input, shape index: {}]   ;;  %s1487_s9 = inlined_call_operand.vmem [shape: f32[8,1], index: 9, kind: input, shape index: {}]   ;;  %s1488_s10 = inlined_call_operand.vmem [shape: f32[8,8], index: 10, kind: input, shape index: {}]   ;;  %s1489_s11 = inlined_call_operand.hbm [shape: f32[8,8], index: 11, kind: output, shape index: {}]  }
   0x1   :  { %17 = vsyncpa [#allocation6], 0 }
   0x2   :  { %18 = vsyncpa [#allocation9], 0 }
   0x3   :  { %19 = vsyncpa [#allocation4], 0  ;;  %s1176_s17 = smov [#allocation5]   ;;  %s1177_s19 = smov [#allocation2]  }
   0x4   :  { %s40_s18 = sshll.u32 %s1176_s17, 4  ;;  %s27_s20 = sshll.u32 %s1177_s19, 4  ;;  %s41_s18 = int_to_ptr.vmem [resolvable:$true] %s40_s18  ;;  %s1246_s20 = int_to_ptr.vmem [resolvable:$true] %s27_s20 }
   0x5   :  { %s1058_s23 = scalar_lea.hbm %s1480_s2, 16 }
   0x6   :  { %p1059_p0 = scmp.ne.s32.totalorder %s1480_s2, %s1058_s23  ;;  %p1062_p1 = scmp.lt.u32.totalorder %s1058_s23, %s1480_s2 }
   0x8   :  { %p1064_p2 = pnand %p1062_p1, %p1059_p0 }
   0xa   :  { %1067 = shalt.err (!%p1064_p2)
}
   0xb   :  { %s1068_s28 = scalar_lea.vmem %s41_s18, 16  ;;  %s1072_s29 = scalar_lea.vmem %s41_s18, 32 }
   0xc   :  { %p1069_p3 = scmp.ne.s32.totalorder %s41_s18, %s1068_s28  ;;  %p1073_p4 = scmp.lt.s32.totalorder %s41_s18, %s41_s18 }
   0xd   :  { %p1074_p5 = scmp.lt.s32.totalorder %s1072_s29, %s1068_s28 }
   0xf   :  { %p1075_p6 = por %p1074_p5, %p1073_p4 }
  0x11   :  { %p1076_p7 = pnand %p1075_p6, %p1069_p3 }
  0x13   :  { %1079 = shalt.err (!%p1076_p7)
}
  0x14   :  { %43 = dma.hbm_to_vmem [thread:$0]  %s1480_s2, 16, %s41_s18, [#allocation6]  }
  0x15   :  { %s1080_s15 = scalar_lea.hbm %s1479_s1, 768 }
  0x16   :  { %p1081_p8 = scmp.ne.s32.totalorder %s1479_s1, %s1080_s15  ;;  %p1084_p9 = scmp.lt.u32.totalorder %s1080_s15, %s1479_s1 }
  0x18   :  { %p1086_p10 = pnand %p1084_p9, %p1081_p8 }
  0x1a   :  { %1089 = shalt.err (!%p1086_p10)
}
  0x1b   :  { %s1090_s22 = scalar_lea.vmem %s1246_s20, 768  ;;  %p1095_p12 = scmp.lt.s32.totalorder %s1246_s20, %s1246_s20 }
  0x1c   :  { %p1091_p11 = scmp.ne.s32.totalorder %s1246_s20, %s1090_s22  ;;  %p1096_p13 = scmp.lt.s32.totalorder %s1090_s22, %s1090_s22 }
  0x1e   :  { %p1097_p0 = por %p1096_p13, %p1095_p12 }
  0x20   :  { %p1098_p1 = pnand %p1097_p0, %p1091_p11 }
  0x22   :  { %1101 = shalt.err (!%p1098_p1)
}
  0x23   :  { %s1178_s2 = smov 64   ;;  %s1179_s18 = smov 4  }
  0x24   :  { %33 = dma.hbm_to_vmem [thread:$0]  %s1479_s1, 768, %s1246_s20, [#allocation3], %s1178_s2, %s1178_s2, %s1179_s18  }
  0x25   :  { %s1180_s25 = smov [#allocation7]   ;;  %s1181_s27 = smov [#allocation8]  }
  0x26   :  { %s49_s26 = sshll.u32 %s1180_s25, 4  ;;  %s67_s28 = sshll.u32 %s1181_s27, 4  ;;  %s50_s26 = int_to_ptr.vmem [resolvable:$true] %s49_s26  ;;  %s1280_s28 = int_to_ptr.vmem [resolvable:$true] %s67_s28 }
  0x27   :  { %s1102_s12 = scalar_lea.hbm %s1481_s3, 2048 }
  0x28   :  { %p1103_p2 = scmp.ne.s32.totalorder %s1481_s3, %s1102_s12  ;;  %p1106_p3 = scmp.lt.u32.totalorder %s1102_s12, %s1481_s3 }
  0x2a   :  { %p1108_p4 = pnand %p1106_p3, %p1103_p2 }
  0x2c   :  { %1111 = shalt.err (!%p1108_p4)
}
  0x2d   :  { %s1112_s1 = scalar_lea.vmem %s50_s26, 2048  ;;  %p1117_p6 = scmp.lt.s32.totalorder %s50_s26, %s50_s26 }
  0x2e   :  { %p1113_p5 = scmp.ne.s32.totalorder %s50_s26, %s1112_s1  ;;  %p1118_p7 = scmp.lt.s32.totalorder %s1112_s1, %s1112_s1 }
  0x30   :  { %p1119_p8 = por %p1118_p7, %p1117_p6 }
  0x32   :  { %p1120_p9 = pnand %p1119_p8, %p1113_p5 }
  0x34   :  { %1123 = shalt.err (!%p1120_p9)
}
  0x35   :  { %55 = dma.hbm_to_vmem [thread:$0]  %s1481_s3, 2048, %s50_s26, [#allocation6], %s1178_s2, %s1178_s2, %s1179_s18  }
  0x36   :  { %s1124_s22 = scalar_lea.hbm %s1485_s7, 1024 }
  0x37   :  { %p1125_p10 = scmp.ne.s32.totalorder %s1485_s7, %s1124_s22  ;;  %p1128_p11 = scmp.lt.u32.totalorder %s1124_s22, %s1485_s7 }
  0x39   :  { %p1130_p12 = pnand %p1128_p11, %p1125_p10 }
  0x3b   :  { %1133 = shalt.err (!%p1130_p12)
}
  0x3c   :  { %s1134_s29 = scalar_lea.vmem %s1280_s28, 1024  ;;  %p1139_p0 = scmp.lt.s32.totalorder %s1280_s28, %s1280_s28 }
  0x3d   :  { %p1135_p13 = scmp.ne.s32.totalorder %s1280_s28, %s1134_s29  ;;  %p1140_p1 = scmp.lt.s32.totalorder %s1134_s29, %s1134_s29 }
  0x3f   :  { %p1141_p2 = por %p1140_p1, %p1139_p0 }
  0x41   :  { %p1142_p3 = pnand %p1141_p2, %p1135_p13 }
  0x43   :  { %1145 = shalt.err (!%p1142_p3)
}
  0x44   :  { %73 = dma.hbm_to_vmem [thread:$0]  %s1485_s7, 1024, %s1280_s28, [#allocation9], %s1178_s2, %s1178_s2, %s1179_s18  }
  0x45   :  { %1168 = dma.done.wait [#allocation3], 768  }
  0x46   :  { %1169 = vsyncadd [#allocation3], 4294966528 }
  0x47   :  { %1170 = dma.done.wait [#allocation6], 2064  }
  0x48   :  { %1171 = vsyncadd [#allocation6], 4294965232 }
  0x49   :  { %1172 = dma.done.wait [#allocation9], 1024  }
  0x4a   :  { %1173 = vsyncadd [#allocation9], 4294966272  ;;  %v1182_v0 = vmov 0.0   ;;  %vm1183_vm0 = vmmov 0   ;;  %v1024_v1 = vld [vmem:[#allocation2] sm:$0xff]   ;;  %v1025_v2 = vld [vmem:[#allocation2 + $0x8] sm:$0xff]  }
  0x4b   :  { %871 = vmatprep.subr.bf16.mxu0 %v1182_v0  ;;  %883 = vmatprep.mubr.msk.bf16.mxu0 %vm1183_vm0, %v1182_v0  ;;  %v1026_v3 = vld [vmem:[#allocation2 + $0x10] sm:$0xff]   ;;  %v1328_v5 = vld [vmem:[#allocation8 + $0x8] sm:$0xff]   ;;  %v1332_v8 = vld [vmem:[#allocation8 + $0x10] sm:$0xff]   ;;  %vm149_vm1 = vcmask 785408   ;;  %vm748_vm2 = vcmask 64512  }
  0x4c   :  { %887 = vmatprep.subr.bf16.mxu1 %v1182_v0  ;;  %903 = vmatprep.mubr.msk.bf16.mxu1 %vm1183_vm0, %v1182_v0  ;;  %v1325_v4 = vld [vmem:[#allocation8] sm:$0xff]   ;;  %v1028_v7 = vld [vmem:[#allocation2 + $0x20] sm:$0xff]   ;;  %v1337_v9 = vld [vmem:[#allocation8 + $0x18] sm:$0xff]  }
  0x4d   :  { %872 = vmatpush3.bf16.msra.mxu0 %v1024_v1  ;;  %888 = vmatpush3.bf16.msra.mxu1 %v1325_v4  ;;  %v1027_v6 = vld [vmem:[#allocation2 + $0x18] sm:$0xff]   ;;  %v1029_v10 = vld [vmem:[#allocation2 + $0x28] sm:$0xff]   ;;  %v93_v12 = vld [vmem:[%s1478_s0] sm:$0xf] }
  0x4e   :  { %873 = vmatprep.subr.bf16.mxu0 %v1182_v0  ;;  %889 = vmatprep.subr.bf16.mxu1 %v1182_v0  ;;  %v1342_v11 = vld [vmem:[#allocation8 + $0x20] sm:$0xff]   ;;  %v1351_v13 = vld [vmem:[#allocation8 + $0x28] sm:$0xff]   ;;  %v1370_v14 = vld [vmem:[#allocation8 + $0x30] sm:$0xff]  }
  0x4f   :  { %v1376_v15 = vld [vmem:[#allocation8 + $0x38] sm:$0xff]   ;;  %v1038_v24 = vld [vmem:[#allocation7] sm:$0xff]   ;;  %v1039_v25 = vld [vmem:[#allocation7 + $0x8] sm:$0xff]  }
  0x50   :  { %v767_v16 = vld [vmem:[#allocation5] ss:$0 sm:$0xff]  ;;  %v1040_v34 = vld [vmem:[#allocation7 + $0x10] sm:$0xff]   ;;  %v1042_v36 = vld [vmem:[#allocation7 + $0x20] sm:$0xff]  }
  0x51   :  { %874 = vmatpush3.bf16.msra.mxu0 %v1025_v2  ;;  %890 = vmatpush3.bf16.msra.mxu1 %v1328_v5  ;;  %v1041_v35 = vld [vmem:[#allocation7 + $0x18] sm:$0xff]   ;;  %v1043_v37 = vld [vmem:[#allocation7 + $0x28] sm:$0xff]   ;;  %v1044_v38 = vld [vmem:[#allocation7 + $0x30] sm:$0xff]  }
  0x52   :  { %875 = vmatprep.subr.bf16.mxu0 %v1182_v0  ;;  %891 = vmatprep.subr.bf16.mxu1 %v1182_v0  ;;  %v1045_v39 = vld [vmem:[#allocation7 + $0x38] sm:$0xff]   ;;  %v783_v47 = vld [vmem:[%s1483_s5] ss:$0 sm:$0xff]  ;;  %v1046_v61 = vld [vmem:[#allocation7 + $0x40] sm:$0xff]  }
  0x53   :  { %v784_v49 = vld [vmem:[%s1484_s6] ss:$0 sm:$0xff] }
  0x54   :  { %v785_v53 = vld [vmem:[%s1482_s4] ss:$0 sm:$0xff] }
  0x55   :  { %876 = vmatpush3.bf16.msra.mxu0 %v1026_v3  ;;  %892 = vmatpush3.bf16.msra.mxu1 %v1332_v8  ;;  %v1047_v62 = vld [vmem:[#allocation7 + $0x48] sm:$0xff]  }
  0x56   :  { %877 = vmatprep.subr.bf16.mxu0 %v1182_v0  ;;  %893 = vmatprep.subr.bf16.mxu1 %v1182_v0 }
  0x59   :  { %878 = vmatpush3.bf16.msra.mxu0 %v1027_v6  ;;  %894 = vmatpush3.bf16.msra.mxu1 %v1337_v9 }
  0x5a   :  { %879 = vmatprep.subr.bf16.mxu0 %v1182_v0  ;;  %895 = vmatprep.subr.bf16.mxu1 %v1182_v0 }
  0x5d   :  { %880 = vmatpush3.bf16.msra.mxu0 %v1028_v7  ;;  %896 = vmatpush3.bf16.msra.mxu1 %v1342_v11 }
  0x5e   :  { %881 = vmatprep.subr.bf16.mxu0 %v1182_v0  ;;  %897 = vmatprep.subr.bf16.mxu1 %v1182_v0 }
  0x61   :  { %882 = vmatpush3.bf16.msra.mxu0 %v1029_v10  ;;  %898 = vmatpush3.bf16.msra.mxu1 %v1351_v13  ;;  %v1050_v10 = vld [vmem:[#allocation7 + $0x60] sm:$0xff]  }
  0x62   :  { %907 = vmatprep.subr.bf16.mxu0 %v1182_v0  ;;  %899 = vmatprep.subr.bf16.mxu1 %v1182_v0 }
  0x64   :  { %884 = vmatmul.mubr.msk.bf16.vlgmr.msra.gmra.mrb[0].mxu0 %vm149_vm1, %v93_v12  ;;  %v1052_v12 = vld [vmem:[#allocation7 + $0x70] sm:$0xff]  }
  0x65   :  { %908 = vmatpush3.bf16.msra.mxu0 %v1325_v4  ;;  %923 = vmatprep.mubr.msk.bf16.mxu0 %vm1183_vm0, %v1182_v0 }
  0x66   :  { %909 = vmatprep.subr.bf16.mxu0 %v1182_v0  ;;  %900 = vmatpush3.bf16.msra.mxu1 %v1370_v14 }
  0x67   :  { %901 = vmatprep.subr.bf16.mxu1 %v1182_v0 }
  0x69   :  { %910 = vmatpush3.bf16.msra.mxu0 %v1328_v5 }
  0x6a   :  { %911 = vmatprep.subr.bf16.mxu0 %v1182_v0  ;;  %902 = vmatpush3.bf16.msra.mxu1 %v1376_v15 }
  0x6b   :  { %927 = vmatprep.subr.bf16.mxu1 %v1182_v0 }
  0x6d   :  { %912 = vmatpush3.bf16.msra.mxu0 %v1332_v8 }
  0x6e   :  { %913 = vmatprep.subr.bf16.mxu0 %v1182_v0 }
  0x71   :  { %914 = vmatpush3.bf16.msra.mxu0 %v1337_v9 }
  0x72   :  { %915 = vmatprep.subr.bf16.mxu0 %v1182_v0 }
  0x75   :  { %916 = vmatpush3.bf16.msra.mxu0 %v1342_v11 }
  0x76   :  { %917 = vmatprep.subr.bf16.mxu0 %v1182_v0 }
  0x79   :  { %918 = vmatpush3.bf16.msra.mxu0 %v1351_v13 }
  0x7a   :  { %919 = vmatprep.subr.bf16.mxu0 %v1182_v0 }
  0x7d   :  { %920 = vmatpush3.bf16.msra.mxu0 %v1370_v14 }
  0x7e   :  { %921 = vmatprep.subr.bf16.mxu0 %v1182_v0 }
  0x81   :  { %922 = vmatpush3.bf16.msra.mxu0 %v1376_v15 }
  0x82   :  { %947 = vmatprep.subr.bf16.mxu0 %v1182_v0 }
 0x137   :  { %v187_v17 = vpop.f32.mrb[0].mxu0 }
 0x138   :  { %v188_v18 = vadd.f32 %v767_v16, %v187_v17  ;;  %v885_v19 = vpop.f32.mrb[1].mxu0 }
 0x139   :  { %v190_v20 = vpop.f32.mrb[2].mxu0 }
 0x13a   :  { %v193_v21 = vmax.f32 %v188_v18, 0.0  ;;  %v886_v22 = vpop.f32.mrb[3].mxu0 }
 0x13c   :  { %v194_v23 = vpack.c.bf16 %v193_v21, %v193_v21 }
 0x13e   :  { %904 = vmatmul.mubr.bf16.vlgmr.msra.gmra.mrb[0].mxu1 %v194_v23  ;;  %v797_v23 = vld [vmem:[%s1484_s6 + $0x1] ss:$0 sm:$0xff] }
 0x13f   :  { %943 = vmatprep.mubr.msk.bf16.mxu1 %vm1183_vm0, %v1182_v0  ;;  %928 = vmatpush3.bf16.msra.mxu1 %v1038_v24 }
 0x140   :  { %929 = vmatprep.subr.bf16.mxu1 %v1182_v0 }
 0x143   :  { %930 = vmatpush3.bf16.msra.mxu1 %v1039_v25 }
 0x144   :  { %931 = vmatprep.subr.bf16.mxu1 %v1182_v0 }
 0x147   :  { %932 = vmatpush3.bf16.msra.mxu1 %v1040_v34 }
 0x148   :  { %933 = vmatprep.subr.bf16.mxu1 %v1182_v0 }
 0x14b   :  { %934 = vmatpush3.bf16.msra.mxu1 %v1041_v35 }
 0x14c   :  { %935 = vmatprep.subr.bf16.mxu1 %v1182_v0 }
 0x14f   :  { %936 = vmatpush3.bf16.msra.mxu1 %v1042_v36  ;;  %v698_v36 = vld [vmem:[%s1486_s8] sm:$0xf] }
 0x150   :  { %937 = vmatprep.subr.bf16.mxu1 %v1182_v0 }
 0x153   :  { %938 = vmatpush3.bf16.msra.mxu1 %v1043_v37 }
 0x154   :  { %939 = vmatprep.subr.bf16.mxu1 %v1182_v0 }
 0x157   :  { %940 = vmatpush3.bf16.msra.mxu1 %v1044_v38 }
 0x158   :  { %941 = vmatprep.subr.bf16.mxu1 %v1182_v0 }
 0x15b   :  { %942 = vmatpush3.bf16.msra.mxu1 %v1045_v39  ;;  %v746_v39 = vld [vmem:[%s1488_s10] sm:$0xff] }
 0x15c   :  { %967 = vmatprep.subr.bf16.mxu1 %v1182_v0 }
 0x211   :  { %v293_v26 = vpop.f32.mrb[0].mxu1 }
 0x212   :  { %v299_v27 = vmul.f32 0.03125, %v293_v26  ;;  %v905_v28 = vpop.f32.mrb[1].mxu1  ;;  %v700_v26 = vld [vmem:[%s1487_s9] sm:$0xff] }
 0x213   :  { %v296_v29 = vpop.f32.mrb[2].mxu1  ;;  %v799_v28 = vld [vmem:[%s1482_s4 + $0x1] ss:$0 sm:$0xff]  ;;  %s1185_s4 = smov [#allocation10]  }
 0x214   :  { %v300_v30 = vsub.f32 %v193_v21, %v299_v27  ;;  %v906_v31 = vpop.f32.mrb[3].mxu1  ;;  %v795_v21 = vld [vmem:[%s1483_s5 + $0x1] ss:$0 sm:$0xff]  ;;  %v1184_v27 = vmov 0   ;;  %s756_s23 = sshll.u32 %s1185_s4, 4  ;;  %s757_s23 = int_to_ptr.vmem [resolvable:$true] %s756_s23 }
 0x215   :  { %1023 = vset.pattern.permute.xlu0 %v1184_v27  ;;  %s1146_s24 = scalar_lea.vmem %s757_s23, 128  ;;  %p1151_p5 = scmp.lt.s32.totalorder %s757_s23, %s757_s23 }
 0x216   :  { %v301_v32 = vmul.f32 %v300_v30, %v300_v30  ;;  %703 = vperm.xlu0 %1023, %v700_v26   ;;  %p1147_p4 = scmp.ne.s32.totalorder %s757_s23, %s1146_s24  ;;  %p1152_p6 = scmp.lt.s32.totalorder %s1146_s24, %s1146_s24 }
 0x218   :  { %v302_v33 = vpack.c.bf16 %v301_v32, %v301_v32  ;;  %p1153_p7 = por %p1152_p6, %p1151_p5 }
 0x21a   :  { %924 = vmatmul.mubr.bf16.vlgmr.msra.gmra.mrb[4].mxu0 %v302_v33  ;;  %p1154_p8 = pnand %p1153_p7, %p1147_p4 }
 0x21b   :  { %948 = vmatpush3.bf16.msra.mxu0 %v1325_v4  ;;  %963 = vmatprep.mubr.msk.bf16.mxu0 %vm1183_vm0, %v1182_v0 }
 0x21c   :  { %949 = vmatprep.subr.bf16.mxu0 %v1182_v0 }
 0x21f   :  { %950 = vmatpush3.bf16.msra.mxu0 %v1328_v5 }
 0x220   :  { %951 = vmatprep.subr.bf16.mxu0 %v1182_v0 }
 0x223   :  { %952 = vmatpush3.bf16.msra.mxu0 %v1332_v8 }
 0x224   :  { %953 = vmatprep.subr.bf16.mxu0 %v1182_v0 }
 0x227   :  { %954 = vmatpush3.bf16.msra.mxu0 %v1337_v9 }
 0x228   :  { %955 = vmatprep.subr.bf16.mxu0 %v1182_v0 }
 0x22b   :  { %956 = vmatpush3.bf16.msra.mxu0 %v1342_v11 }
 0x22c   :  { %957 = vmatprep.subr.bf16.mxu0 %v1182_v0 }
 0x22f   :  { %958 = vmatpush3.bf16.msra.mxu0 %v1351_v13 }
 0x230   :  { %959 = vmatprep.subr.bf16.mxu0 %v1182_v0 }
 0x233   :  { %960 = vmatpush3.bf16.msra.mxu0 %v1370_v14 }
 0x234   :  { %961 = vmatprep.subr.bf16.mxu0 %v1182_v0 }
 0x237   :  { %962 = vmatpush3.bf16.msra.mxu0 %v1376_v15 }
 0x238   :  { %987 = vmatprep.subr.bf16.mxu0 %v1182_v0 }
 0x295   :  { %v704_v37 = vpop.permute.xlu0 %703 }
 0x2ed   :  { %v337_v40 = vpop.f32.mrb[4].mxu0 }
 0x2ee   :  { %v343_v41 = vmul.f32 0.03125, %v337_v40  ;;  %v925_v42 = vpop.f32.mrb[5].mxu0 }
 0x2ef   :  { %v340_v43 = vpop.f32.mrb[6].mxu0 }
 0x2f0   :  { %v344_v44 = vadd.f32 1e-05, %v343_v41  ;;  %v926_v45 = vpop.f32.mrb[7].mxu0 }
 0x2f2   :  { %1054 = vrsqrt.f32 %v344_v44 }
 0x2fc   :  { %v1055_v46 = vpop.eup %1054 }
 0x2fd   :  { %v346_v48 = vmul.f32 %v1055_v46, %v300_v30 }
 0x2ff   :  { %v354_v50 = vmul.f32 %v783_v47, %v346_v48 }
 0x301   :  { %v362_v51 = vadd.f32 %v784_v49, %v354_v50 }
 0x303   :  { %v363_v52 = vpack.c.bf16 %v362_v51, %v362_v51 }
 0x305   :  { %944 = vmatmul.mubr.bf16.vlgmr.msra.gmra.mrb[4].mxu1 %v363_v52 }
 0x306   :  { %968 = vmatpush3.bf16.msra.mxu1 %v1325_v4  ;;  %983 = vmatprep.mubr.msk.bf16.mxu1 %vm1183_vm0, %v1182_v0 }
 0x307   :  { %969 = vmatprep.subr.bf16.mxu1 %v1182_v0 }
 0x30a   :  { %970 = vmatpush3.bf16.msra.mxu1 %v1328_v5 }
 0x30b   :  { %971 = vmatprep.subr.bf16.mxu1 %v1182_v0 }
 0x30e   :  { %972 = vmatpush3.bf16.msra.mxu1 %v1332_v8  ;;  %v1048_v8 = vld [vmem:[#allocation7 + $0x50] sm:$0xff]  }
 0x30f   :  { %973 = vmatprep.subr.bf16.mxu1 %v1182_v0 }
 0x312   :  { %974 = vmatpush3.bf16.msra.mxu1 %v1337_v9  ;;  %v1049_v9 = vld [vmem:[#allocation7 + $0x58] sm:$0xff]  }
 0x313   :  { %975 = vmatprep.subr.bf16.mxu1 %v1182_v0 }
 0x316   :  { %976 = vmatpush3.bf16.msra.mxu1 %v1342_v11  ;;  %v1051_v11 = vld [vmem:[#allocation7 + $0x68] sm:$0xff]  }
 0x317   :  { %977 = vmatprep.subr.bf16.mxu1 %v1182_v0 }
 0x31a   :  { %978 = vmatpush3.bf16.msra.mxu1 %v1351_v13  ;;  %v1053_v13 = vld [vmem:[#allocation7 + $0x78] sm:$0xff]  }
 0x31b   :  { %979 = vmatprep.subr.bf16.mxu1 %v1182_v0 }
 0x31e   :  { %980 = vmatpush3.bf16.msra.mxu1 %v1370_v14 }
 0x31f   :  { %981 = vmatprep.subr.bf16.mxu1 %v1182_v0 }
 0x322   :  { %982 = vmatpush3.bf16.msra.mxu1 %v1376_v15 }
 0x323   :  { %1007 = vmatprep.subr.bf16.mxu1 %v1182_v0 }
 0x3d8   :  { %v469_v54 = vpop.f32.mrb[4].mxu1 }
 0x3d9   :  { %v470_v55 = vadd.f32 %v785_v53, %v469_v54  ;;  %v945_v56 = vpop.f32.mrb[5].mxu1 }
 0x3da   :  { %v472_v57 = vpop.f32.mrb[6].mxu1 }
 0x3db   :  { %v475_v58 = vmax.f32 %v470_v55, 0.0  ;;  %v946_v59 = vpop.f32.mrb[7].mxu1 }
 0x3dd   :  { %v476_v60 = vpack.c.bf16 %v475_v58, %v475_v58 }
 0x3df   :  { %964 = vmatmul.mubr.bf16.vlgmr.msra.gmra.mrb[8].mxu0 %v476_v60 }
 0x3e0   :  { %1003 = vmatprep.mubr.msk.bf16.mxu0 %vm1183_vm0, %v1182_v0  ;;  %988 = vmatpush3.bf16.msra.mxu0 %v1046_v61 }
 0x3e1   :  { %989 = vmatprep.subr.bf16.mxu0 %v1182_v0 }
 0x3e4   :  { %990 = vmatpush3.bf16.msra.mxu0 %v1047_v62 }
 0x3e5   :  { %991 = vmatprep.subr.bf16.mxu0 %v1182_v0 }
 0x3e8   :  { %992 = vmatpush3.bf16.msra.mxu0 %v1048_v8 }
 0x3e9   :  { %993 = vmatprep.subr.bf16.mxu0 %v1182_v0 }
 0x3ec   :  { %994 = vmatpush3.bf16.msra.mxu0 %v1049_v9 }
 0x3ed   :  { %995 = vmatprep.subr.bf16.mxu0 %v1182_v0 }
 0x3f0   :  { %996 = vmatpush3.bf16.msra.mxu0 %v1050_v10 }
 0x3f1   :  { %997 = vmatprep.subr.bf16.mxu0 %v1182_v0 }
 0x3f4   :  { %998 = vmatpush3.bf16.msra.mxu0 %v1051_v11 }
 0x3f5   :  { %999 = vmatprep.subr.bf16.mxu0 %v1182_v0 }
 0x3f8   :  { %1000 = vmatpush3.bf16.msra.mxu0 %v1052_v12 }
 0x3f9   :  { %1001 = vmatprep.subr.bf16.mxu0 %v1182_v0 }
 0x3fc   :  { %1002 = vmatpush3.bf16.msra.mxu0 %v1053_v13 }
 0x4b2   :  { %v511_v63 = vpop.f32.mrb[8].mxu0 }
 0x4b3   :  { %v517_v1 = vmul.f32 0.03125, %v511_v63  ;;  %v965_v2 = vpop.f32.mrb[9].mxu0 }
 0x4b4   :  { %v514_v3 = vpop.f32.mrb[10].mxu0 }
 0x4b5   :  { %v518_v4 = vsub.f32 %v475_v58, %v517_v1  ;;  %v966_v5 = vpop.f32.mrb[11].mxu0 }
 0x4b7   :  { %v519_v6 = vmul.f32 %v518_v4, %v518_v4 }
 0x4b9   :  { %v520_v7 = vpack.c.bf16 %v519_v6, %v519_v6 }
 0x4bb   :  { %984 = vmatmul.mubr.bf16.vlgmr.msra.gmra.mrb[8].mxu1 %v520_v7 }
 0x4bc   :  { %1009 = vmatprep.mubr.msk.bf16.mxu1 %vm1183_vm0, %v1182_v0 }
 0x58e   :  { %v555_v14 = vpop.f32.mrb[8].mxu1 }
 0x58f   :  { %v561_v15 = vmul.f32 0.03125, %v555_v14  ;;  %v985_v16 = vpop.f32.mrb[9].mxu1 }
 0x590   :  { %v558_v17 = vpop.f32.mrb[10].mxu1 }
 0x591   :  { %v562_v18 = vadd.f32 1e-05, %v561_v15  ;;  %v986_v19 = vpop.f32.mrb[11].mxu1 }
 0x593   :  { %1056 = vrsqrt.f32 %v562_v18 }
 0x59d   :  { %v1057_v20 = vpop.eup %1056 }
 0x59e   :  { %v564_v22 = vmul.f32 %v1057_v20, %v518_v4 }
 0x5a0   :  { %v573_v24 = vmul.f32 %v795_v21, %v564_v22 }
 0x5a2   :  { %v582_v0 = vadd.f32 %v797_v23, %v573_v24 }
 0x5a4   :  { %v583_v25 = vpack.c.bf16 %v582_v0, %v582_v0 }
 0x5a6   :  { %1004 = vmatmul.mubr.bf16.vlgmr.msra.gmra.mrb[12].mxu0 %v583_v25 }
 0x679   :  { %v691_v29 = vpop.f32.mrb[12].mxu0 }
 0x67a   :  { %v692_v30 = vadd.f32 %v799_v28, %v691_v29  ;;  %v1005_v31 = vpop.f32.mrb[13].mxu0 }
 0x67b   :  { %v694_v32 = vpop.f32.mrb[14].mxu0 }
 0x67c   :  { %v697_v33 = vmax.f32 %v692_v30, 0.0  ;;  %v1006_v34 = vpop.f32.mrb[15].mxu0 }
 0x67e   :  { %v699_v35 = vpack.c.bf16 %v697_v33, %v697_v33 }
 0x680   :  { %1008 = vmatpush3.bf16.xpose.msra.mxu1 %v699_v35 }
 0x687   :  { %1010 = vmatmul.mubr.bf16.vlgmr.msra.gmra.mrb[12].mxu1 %v698_v36 }
 0x75a   :  { %v740_v38 = vpop.f32.mrb[12].mxu1 }
 0x75b   :  { %v741_v40 = vadd.f32 %v740_v38, %v704_v37  ;;  %v1011_v41 = vpop.f32.mrb[13].mxu1 }
 0x75c   :  { %v743_v42 = vpop.f32.mrb[14].mxu1 }
 0x75d   :  { %v747_v43 = vmul.f32 %v746_v39, %v741_v40  ;;  %v1012_v44 = vpop.f32.mrb[15].mxu1 }
 0x75f   :  { %749 = vst.msk [vmem:[#allocation10] sm:$0xff] %vm748_vm2, %v747_v43 }
 0x760   :  { %1157 = shalt.err (!%p1154_p8)
}
 0x761   :  { %s1158_s10 = scalar_lea.hbm %s1489_s11, 128 }
 0x762   :  { %p1159_p9 = scmp.ne.s32.totalorder %s1489_s11, %s1158_s10  ;;  %p1162_p10 = scmp.lt.u32.totalorder %s1158_s10, %s1489_s11 }
 0x764   :  { %p1164_p11 = pnand %p1162_p10, %p1159_p9 }
 0x766   :  { %1167 = shalt.err (!%p1164_p11)
}
 0x767   :  { %759 = dma.vmem_to_hbm [thread:$0]  %s757_s23, 128, %s1489_s11, [#allocation4]  }
 0x768   :  { %1174 = dma.done.wait [#allocation4], 128  }
 0x769   :  { %1175 = vsyncadd [#allocation4], 4294967168 }
 0x76a   :  { %763 = vsyncpa [#allocation3], 1 }
 0x76b   :  { %764 = vsyncpa [#allocation6], 1 }
 0x76c   :  { %765 = vsyncpa [#allocation9], 1 }
 0x76d   :  { %766 = vsyncpa [#allocation4], 1 }

</bundles_post_ra>
